<compile_context>
chip_gen: v6e
topology: v6e:2x2x1
jax: 0.10.0
libtpu: 0.0.40
codegen_flags: <defaults>
</compile_context>

<pallas_src>
import functools

import jax
import jax.numpy as jnp
from jax.experimental import pallas as pl
from jax.experimental.pallas import tpu as pltpu

LANE = 128
SUBLANE = 8


def _round_up(x, m):
    return ((x + m - 1) // m) * m


def _tpu_generation():
    """Best-effort TPU generation from device_kind (0 if unknown / not TPU)."""
    try:
        kind = jax.devices()[0].device_kind.lower()
    except Exception:
        return 0
    for g in range(9, 1, -1):
        if f"v{g}" in kind:
            return g
    return 0


def actor_kernel(s_ref, w1_ref, b1_ref, w2_ref, b2_ref, w3_ref, b3_ref,
                 out_ref, *, max_action, bf16_elementwise):
    """Fused 3-layer MLP on one batch tile.

    tanh(tanh(x@W1+b1)@W2+b2)@W3+b3 -> max_action * tanh(.)
    bf16 MXU inputs, f32 accumulation. Hidden tanh/bias-add run in bf16 on
    v6e/v7x (bf16 VPU/EUP), f32 on v5e. Final tanh epilogue is always f32.
    """
    x = s_ref[...]                                                    # (TB, S)

    h1 = jnp.dot(x.astype(jnp.bfloat16), w1_ref[...],
                 preferred_element_type=jnp.float32)
    h1 = h1 + b1_ref[...]                                             # f32
    if bf16_elementwise:
        h1 = jnp.tanh(h1.astype(jnp.bfloat16))                        # bf16 EUP
    else:
        h1 = jnp.tanh(h1).astype(jnp.bfloat16)                        # f32 EUP

    h2 = jnp.dot(h1, w2_ref[...], preferred_element_type=jnp.float32)
    h2 = h2 + b2_ref[...]
    if bf16_elementwise:
        h2 = jnp.tanh(h2.astype(jnp.bfloat16))
    else:
        h2 = jnp.tanh(h2).astype(jnp.bfloat16)

    m = jnp.dot(h2, w3_ref[...], preferred_element_type=jnp.float32)
    m = jnp.tanh(m + b3_ref[...])                                     # f32 epilogue

    # max_action is a compile-time Python constant -> folded into the epilogue.
    out_ref[...] = (max_action * m).astype(out_ref.dtype)             # lane-dense store


def prepare_params(w1, b1, w2, b2, w3, b3):
    """One-time parameter preparation (hoisted out of the per-call path).

    Weights are expected in (in_features, out_features) layout (transposed vs.
    PyTorch). Returns bf16 weights, f32 (1, out) biases, and the mean layer
    zero-padded to a full 128 output lanes for a lane-dense store.
    """
    H = w1.shape[1]
    A = w3.shape[1]
    A_pad = _round_up(A, LANE)
    w3p = jnp.zeros((H, A_pad), jnp.float32).at[:, :A].set(w3.astype(jnp.float32))
    b3p = jnp.zeros((A_pad,), jnp.float32).at[:A].set(b3.astype(jnp.float32))
    return (
        w1.astype(jnp.bfloat16),
        b1.astype(jnp.float32).reshape(1, -1),
        w2.astype(jnp.bfloat16),
        b2.astype(jnp.float32).reshape(1, -1),
        w3p.astype(jnp.bfloat16),
        b3p.reshape(1, -1),
    )


@functools.partial(jax.jit, static_argnums=(2, 3),
                   static_argnames=("block_b", "out_dtype"))
def actor_forward(s, params, action_dim, max_action, *,
                  block_b=1024, out_dtype=jnp.float32):
    """s: (B, state_dim) f32.  params: output of prepare_params()."""
    B, S = s.shape
    w1, b1, w2, b2, w3p, b3p = params
    H = w1.shape[1]
    A_pad = w3p.shape[1]

    gen = _tpu_generation()                 # trace-time, static
    bf16_elementwise = gen >= 6             # v6e/v7x have bf16 VPU/EUP paths

    # --- batch tiling.  On v7x (2 TCs) make sure the parallel grid axis has at
    # least 2 steps when the batch allows it, so both cores get work.
    n_splits = 2 if (gen >= 7 and B >= 2 * SUBLANE) else 1
    TB = min(block_b, _round_up(pl.cdiv(B, n_splits), SUBLANE))
    if TB >= B:
        TB = B                               # single (possibly unaligned) block
    grid = pl.cdiv(B, TB)                    # ragged last block: masked by Pallas

    kernel = functools.partial(actor_kernel,
                               max_action=float(max_action),
                               bf16_elementwise=bf16_elementwise)

    itemsize = lambda a: a.size * a.dtype.itemsize
    cost = pl.CostEstimate(
        flops=2 * B * (S * H + H * H + H * A_pad),
        transcendentals=B * (2 * H + A_pad),
        bytes_accessed=(itemsize(s)
                        + sum(itemsize(p) for p in params)
                        + B * A_pad * jnp.dtype(out_dtype).itemsize),
    )

    out_pad = pl.pallas_call(
        kernel,
        out_shape=jax.ShapeDtypeStruct((B, A_pad), out_dtype),
        grid_spec=pl.GridSpec(
            grid=(grid,),
            in_specs=[
                pl.BlockSpec((TB, S), lambda i: (i, 0)),        # batch-tiled input
                pl.BlockSpec((S, H), lambda i: (0, 0)),         # W1 (resident)
                pl.BlockSpec((1, H), lambda i: (0, 0)),         # b1
                pl.BlockSpec((H, H), lambda i: (0, 0)),         # W2
                pl.BlockSpec((1, H), lambda i: (0, 0)),         # b2
                pl.BlockSpec((H, A_pad), lambda i: (0, 0)),     # W3 (lane-padded)
                pl.BlockSpec((1, A_pad), lambda i: (0, 0)),     # b3
            ],
            out_specs=pl.BlockSpec((TB, A_pad), lambda i: (i, 0)),
        ),
        compiler_params=pltpu.CompilerParams(
            dimension_semantics=("parallel",),                  # megacore on v7x
        ),
        cost_estimate=cost,
    )(s, w1, b1, w2, b2, w3p, b3p)

    return out_pad[:, :action_dim]


def orthogonal(key, shape, gain=1.0, dtype=jnp.float32):
    """Deterministic orthogonal init (same semantics as nn.init.orthogonal_)."""
    # TODO(synk): not bit-identical to PyTorch when rows < cols (PyTorch QRs the
    # transposed matrix); only matters if exact init parity is required.
    rows, cols = shape
    n = max(rows, cols)
    a = jax.random.normal(key, (n, n), dtype)
    q, r = jnp.linalg.qr(a)
    q = q * jnp.sign(jnp.diag(r))
    return gain * q[:rows, :cols].astype(dtype)


def reference_forward(s, params, max_action, *, bf16_elementwise):
    """Plain-JAX reference with the same bf16/f32 math mode as the kernel."""
    w1, b1, w2, b2, w3p, b3p = params
    h1 = jnp.dot(s.astype(jnp.bfloat16), w1,
                 preferred_element_type=jnp.float32) + b1
    h1 = (jnp.tanh(h1.astype(jnp.bfloat16)) if bf16_elementwise
          else jnp.tanh(h1).astype(jnp.bfloat16))
    h2 = jnp.dot(h1, w2, preferred_element_type=jnp.float32) + b2
    h2 = (jnp.tanh(h2.astype(jnp.bfloat16)) if bf16_elementwise
          else jnp.tanh(h2).astype(jnp.bfloat16))
    m = jnp.dot(h2, w3p, preferred_element_type=jnp.float32) + b3p
    return max_action * jnp.tanh(m)


if __name__ == "__main__":
    # Small, module-consistent shapes.
    batch = 8
    state_dim = 16
    hidden_width = 32
    action_dim = 4
    max_action = 2.0

    key = jax.random.PRNGKey(0)
    k_s, k1, k2, k3 = jax.random.split(key, 4)

    s = jax.random.normal(k_s, (batch, state_dim), jnp.float32)

    # PyTorch Linear weight is (out, in); store transposed (in, out).
    w1 = orthogonal(k1, (hidden_width, state_dim), gain=1.0).T
    b1 = jnp.zeros((hidden_width,), jnp.float32)
    w2 = orthogonal(k2, (hidden_width, hidden_width), gain=1.0).T
    b2 = jnp.zeros((hidden_width,), jnp.float32)
    w3 = orthogonal(k3, (action_dim, hidden_width), gain=0.01).T
    b3 = jnp.zeros((action_dim,), jnp.float32)
    # log_std parameter exists in the module but is not used by forward().
    log_std = jnp.full((1, action_dim), -0.5, jnp.float32)

    params = prepare_params(w1, b1, w2, b2, w3, b3)   # one-time prep

    out = actor_forward(s, params, action_dim, max_action)
    out = jax.block_until_ready(out)

    ref = reference_forward(s, params, max_action,
                            bf16_elementwise=_tpu_generation() >= 6)
    assert out.shape == (batch, action_dim), out.shape
    assert jnp.allclose(out, ref[:, :action_dim], atol=2e-3, rtol=2e-2), \
        "mismatch vs reference"

    print("KERNEL_OK")
</pallas_src>

<mosaic_0001>
module attributes {stable_mosaic.version = 11 : i64} {
  func.func @actor_kernel(%arg0: i32, %arg1: memref<8x16xf32, #tpu.memory_space<vmem>>, %arg2: memref<16x32xbf16, #tpu.memory_space<vmem>>, %arg3: memref<1x32xf32, #tpu.memory_space<vmem>>, %arg4: memref<32x32xbf16, #tpu.memory_space<vmem>>, %arg5: memref<1x32xf32, #tpu.memory_space<vmem>>, %arg6: memref<32x128xbf16, #tpu.memory_space<vmem>>, %arg7: memref<1x128xf32, #tpu.memory_space<vmem>>, %arg8: memref<8x128xf32, #tpu.memory_space<vmem>>) attributes {dimension_semantics = [#tpu.dimension_semantics<parallel>], iteration_bounds = array<i64: 1>, scalar_prefetch = 0 : i64, scratch_operands = 0 : i64, tpu.core_type = #tpu.core_type<tc>, window_params = [{transform_indices = @transform_0, window_bounds = array<i64: 8, 16>}, {pipeline_mode = #tpu.pipeline_mode<synchronous>, transform_indices = @transform_1, window_bounds = array<i64: 16, 32>}, {pipeline_mode = #tpu.pipeline_mode<synchronous>, transform_indices = @transform_2, window_bounds = array<i64: 1, 32>}, {pipeline_mode = #tpu.pipeline_mode<synchronous>, transform_indices = @transform_3, window_bounds = array<i64: 32, 32>}, {pipeline_mode = #tpu.pipeline_mode<synchronous>, transform_indices = @transform_4, window_bounds = array<i64: 1, 32>}, {pipeline_mode = #tpu.pipeline_mode<synchronous>, transform_indices = @transform_5, window_bounds = array<i64: 32, 128>}, {pipeline_mode = #tpu.pipeline_mode<synchronous>, transform_indices = @transform_6, window_bounds = array<i64: 1, 128>}, {transform_indices = @transform_7, window_bounds = array<i64: 8, 128>}]} {
    %c0 = arith.constant 0 : index
    %c0_0 = arith.constant 0 : index
    %0 = vector.load %arg1[%c0, %c0_0] : memref<8x16xf32, #tpu.memory_space<vmem>>, vector<8x16xf32>
    %1 = arith.truncf %0 : vector<8x16xf32> to vector<8x16xbf16>
    %c0_1 = arith.constant 0 : index
    %c0_2 = arith.constant 0 : index
    %2 = vector.load %arg2[%c0_1, %c0_2] : memref<16x32xbf16, #tpu.memory_space<vmem>>, vector<16x32xbf16>
    %cst = arith.constant dense<0.000000e+00> : vector<8x32xf32>
    %3 = tpu.matmul %1, %2, %cst {dimension_numbers = #tpu.dot_dimension_numbers<[1], [0], [0], [1], [0, 0, 1, 1], [], []>} : vector<8x16xbf16>, vector<16x32xbf16>, vector<8x32xf32> -> vector<8x32xf32>
    %c0_3 = arith.constant 0 : index
    %c0_4 = arith.constant 0 : index
    %4 = vector.load %arg3[%c0_3, %c0_4] : memref<1x32xf32, #tpu.memory_space<vmem>>, vector<1x32xf32>
    %5 = vector.broadcast %4 : vector<1x32xf32> to vector<8x32xf32>
    %6 = arith.addf %3, %5 : vector<8x32xf32>
    %7 = math.tanh %6 : vector<8x32xf32>
    %8 = arith.truncf %7 : vector<8x32xf32> to vector<8x32xbf16>
    %c0_5 = arith.constant 0 : index
    %c0_6 = arith.constant 0 : index
    %9 = vector.load %arg4[%c0_5, %c0_6] : memref<32x32xbf16, #tpu.memory_space<vmem>>, vector<32x32xbf16>
    %cst_7 = arith.constant dense<0.000000e+00> : vector<8x32xf32>
    %10 = tpu.matmul %8, %9, %cst_7 {dimension_numbers = #tpu.dot_dimension_numbers<[1], [0], [0], [1], [0, 0, 1, 1], [], []>} : vector<8x32xbf16>, vector<32x32xbf16>, vector<8x32xf32> -> vector<8x32xf32>
    %c0_8 = arith.constant 0 : index
    %c0_9 = arith.constant 0 : index
    %11 = vector.load %arg5[%c0_8, %c0_9] : memref<1x32xf32, #tpu.memory_space<vmem>>, vector<1x32xf32>
    %12 = vector.broadcast %11 : vector<1x32xf32> to vector<8x32xf32>
    %13 = arith.addf %10, %12 : vector<8x32xf32>
    %14 = math.tanh %13 : vector<8x32xf32>
    %15 = arith.truncf %14 : vector<8x32xf32> to vector<8x32xbf16>
    %c0_10 = arith.constant 0 : index
    %c0_11 = arith.constant 0 : index
    %16 = vector.load %arg6[%c0_10, %c0_11] : memref<32x128xbf16, #tpu.memory_space<vmem>>, vector<32x128xbf16>
    %cst_12 = arith.constant dense<0.000000e+00> : vector<8x128xf32>
    %17 = tpu.matmul %15, %16, %cst_12 {dimension_numbers = #tpu.dot_dimension_numbers<[1], [0], [0], [1], [0, 0, 1, 1], [], []>} : vector<8x32xbf16>, vector<32x128xbf16>, vector<8x128xf32> -> vector<8x128xf32>
    %c0_13 = arith.constant 0 : index
    %c0_14 = arith.constant 0 : index
    %18 = vector.load %arg7[%c0_13, %c0_14] : memref<1x128xf32, #tpu.memory_space<vmem>>, vector<1x128xf32>
    %19 = vector.broadcast %18 : vector<1x128xf32> to vector<8x128xf32>
    %20 = arith.addf %17, %19 : vector<8x128xf32>
    %21 = math.tanh %20 : vector<8x128xf32>
    %cst_15 = arith.constant 2.000000e+00 : f32
    %22 = vector.broadcast %cst_15 : f32 to vector<8x128xf32>
    %23 = arith.mulf %22, %21 : vector<8x128xf32>
    %c0_16 = arith.constant 0 : index
    %c0_17 = arith.constant 0 : index
    %24 = vector.load %arg8[%c0_16, %c0_17] : memref<8x128xf32, #tpu.memory_space<vmem>>, vector<8x128xf32>
    tpu.vector_store %arg8[%c0_16, %c0_17], %23 {strides = array<i32>} : memref<8x128xf32, #tpu.memory_space<vmem>>, vector<8x128xf32>,
    return
  }
  func.func @transform_0(%arg0: i32) -> (i32, i32) {
    %c0_i32 = arith.constant 0 : i32
    %c0_i32_0 = arith.constant 0 : i32
    return %arg0, %c0_i32 : i32, i32
  }
  func.func @transform_1(%arg0: i32) -> (i32, i32) {
    %c0_i32 = arith.constant 0 : i32
    %c0_i32_0 = arith.constant 0 : i32
    %c0_i32_1 = arith.constant 0 : i32
    return %c0_i32, %c0_i32_0 : i32, i32
  }
  func.func @transform_2(%arg0: i32) -> (i32, i32) {
    %c0_i32 = arith.constant 0 : i32
    %c0_i32_0 = arith.constant 0 : i32
    %c0_i32_1 = arith.constant 0 : i32
    return %c0_i32, %c0_i32_0 : i32, i32
  }
  func.func @transform_3(%arg0: i32) -> (i32, i32) {
    %c0_i32 = arith.constant 0 : i32
    %c0_i32_0 = arith.constant 0 : i32
    %c0_i32_1 = arith.constant 0 : i32
    return %c0_i32, %c0_i32_0 : i32, i32
  }
  func.func @transform_4(%arg0: i32) -> (i32, i32) {
    %c0_i32 = arith.constant 0 : i32
    %c0_i32_0 = arith.constant 0 : i32
    %c0_i32_1 = arith.constant 0 : i32
    return %c0_i32, %c0_i32_0 : i32, i32
  }
  func.func @transform_5(%arg0: i32) -> (i32, i32) {
    %c0_i32 = arith.constant 0 : i32
    %c0_i32_0 = arith.constant 0 : i32
    %c0_i32_1 = arith.constant 0 : i32
    return %c0_i32, %c0_i32_0 : i32, i32
  }
  func.func @transform_6(%arg0: i32) -> (i32, i32) {
    %c0_i32 = arith.constant 0 : i32
    %c0_i32_0 = arith.constant 0 : i32
    %c0_i32_1 = arith.constant 0 : i32
    return %c0_i32, %c0_i32_0 : i32, i32
  }
  func.func @transform_7(%arg0: i32) -> (i32, i32) {
    %c0_i32 = arith.constant 0 : i32
    %c0_i32_0 = arith.constant 0 : i32
    return %arg0, %c0_i32 : i32, i32
  }
}

</mosaic_0001>

<bundles_post_ra>
// kernel: actor_forward.1
= control target key start
LH: loop header
LB: loop body
LE: loop exit
PB: predicated region body
PF: predicated region fallthrough
CT: control target
= control target key end

     0   :  { %12 = vsyncpa [#allocation3], 0  ;;  %s517_s0 = inlined_call_operand.hbm [shape: f32[8,16], index: 0, kind: input, shape index: {}]   ;;  %s518_s1 = inlined_call_operand.hbm [shape: bf16[16,32], index: 1, kind: input, shape index: {}]   ;;  %s519_s2 = inlined_call_operand.vmem [shape: f32[1,32], index: 2, kind: input, shape index: {}]   ;;  %s520_s3 = inlined_call_operand.hbm [shape: bf16[32,32], index: 3, kind: input, shape index: {}]   ;;  %s521_s4 = inlined_call_operand.vmem [shape: f32[1,32], index: 4, kind: input, shape index: {}]   ;;  %s522_s5 = inlined_call_operand.hbm [shape: bf16[32,128], index: 5, kind: input, shape index: {}]   ;;  %s523_s6 = inlined_call_operand.vmem [shape: f32[1,128], index: 6, kind: input, shape index: {}]   ;;  %s524_s7 = inlined_call_operand.vmem [shape: f32[8,128], index: 7, kind: output, shape index: {}]  }
   0x1   :  { %13 = vsyncpa [#allocation5], 0 }
   0x2   :  { %14 = vsyncpa [#allocation8], 0  ;;  %s434_s24 = smov [#allocation4]  }
   0x3   :  { %s30_s25 = sshll.u32 %s434_s24, 4  ;;  %s31_s25 = int_to_ptr.vmem [resolvable:$true] %s30_s25 }
   0x4   :  { %s356_s26 = scalar_lea.vmem %s31_s25, 128  ;;  %p361_p1 = scmp.lt.s32.totalorder %s31_s25, %s31_s25 }
   0x5   :  { %p357_p0 = scmp.ne.s32.totalorder %s31_s25, %s356_s26  ;;  %p362_p2 = scmp.lt.s32.totalorder %s356_s26, %s356_s26 }
   0x7   :  { %p363_p3 = por %p362_p2, %p361_p1 }
   0x9   :  { %p364_p4 = pnand %p363_p3, %p357_p0 }
   0xb   :  { %367 = shalt.err (!%p364_p4)
}
   0xc   :  { %s435_s27 = smov 64   ;;  %s436_s28 = smov 4  }
   0xd   :  { %36 = dma.hbm_to_vmem [thread:$0]  %s518_s1, 128, %s31_s25, [#allocation5], %s435_s27, %s435_s27, %s436_s28  }
   0xe   :  { %s437_s8 = smov [#allocation2]   ;;  %s438_s10 = smov [#allocation6]  }
   0xf   :  { %s21_s9 = sshll.u32 %s437_s8, 4  ;;  %s44_s11 = sshll.u32 %s438_s10, 4  ;;  %s22_s9 = int_to_ptr.vmem [resolvable:$true] %s21_s9  ;;  %s45_s11 = int_to_ptr.vmem [resolvable:$true] %s44_s11 }
  0x10   :  { %s376_s12 = scalar_lea.vmem %s22_s9, 128  ;;  %p381_p6 = scmp.lt.s32.totalorder %s22_s9, %s22_s9 }
  0x11   :  { %p377_p5 = scmp.ne.s32.totalorder %s22_s9, %s376_s12  ;;  %p382_p7 = scmp.lt.s32.totalorder %s376_s12, %s376_s12 }
  0x13   :  { %p383_p8 = por %p382_p7, %p381_p6 }
  0x15   :  { %p384_p9 = pnand %p383_p8, %p377_p5 }
  0x17   :  { %387 = shalt.err (!%p384_p9)
}
  0x18   :  { %24 = dma.hbm_to_vmem [thread:$0]  %s517_s0, 128, %s22_s9, [#allocation3]  }
  0x19   :  { %s396_s15 = scalar_lea.vmem %s45_s11, 256  ;;  %p401_p11 = scmp.lt.s32.totalorder %s45_s11, %s45_s11 }
  0x1a   :  { %p397_p10 = scmp.ne.s32.totalorder %s45_s11, %s396_s15  ;;  %p402_p12 = scmp.lt.s32.totalorder %s396_s15, %s396_s15 }
  0x1c   :  { %p403_p13 = por %p402_p12, %p401_p11 }
  0x1e   :  { %p404_p0 = pnand %p403_p13, %p397_p10 }
  0x20   :  { %407 = shalt.err (!%p404_p0)
}
  0x21   :  { %50 = dma.hbm_to_vmem [thread:$0]  %s520_s3, 256, %s45_s11, [#allocation5], %s435_s27, %s435_s27, %s436_s28  }
  0x22   :  { %s439_s17 = smov [#allocation7]  }
  0x23   :  { %s58_s18 = sshll.u32 %s439_s17, 4  ;;  %s59_s18 = int_to_ptr.vmem [resolvable:$true] %s58_s18 }
  0x24   :  { %s416_s19 = scalar_lea.vmem %s59_s18, 256  ;;  %p421_p2 = scmp.lt.s32.totalorder %s59_s18, %s59_s18 }
  0x25   :  { %p417_p1 = scmp.ne.s32.totalorder %s59_s18, %s416_s19  ;;  %p422_p3 = scmp.lt.s32.totalorder %s416_s19, %s416_s19 }
  0x27   :  { %p423_p4 = por %p422_p3, %p421_p2 }
  0x29   :  { %p424_p5 = pnand %p423_p4, %p417_p1 }
  0x2b   :  { %427 = shalt.err (!%p424_p5)
}
  0x2c   :  { %64 = dma.hbm_to_vmem [thread:$0]  %s522_s5, 256, %s59_s18, [#allocation8], %s435_s27, %s435_s27, %s436_s28  }
  0x2d   :  { %428 = dma.done.wait [#allocation3], 128  }
  0x2e   :  { %429 = vsyncadd [#allocation3], 4294967168 }
  0x2f   :  { %430 = dma.done.wait [#allocation5], 384  }
  0x30   :  { %431 = vsyncadd [#allocation5], 4294966912 }
  0x31   :  { %432 = dma.done.wait [#allocation8], 256  }
  0x32   :  { %433 = vsyncadd [#allocation8], 4294967040  ;;  %v440_v0 = vmov 0.0   ;;  %vm441_vm0 = vmmov 0   ;;  %v337_v1 = vld [vmem:[#allocation4] sm:$0xff]   ;;  %v80_v2 = vld [vmem:[#allocation2] sm:$0xff] }
  0x33   :  { %307 = vmatprep.subr.bf16.mxu0 %v440_v0  ;;  %309 = vmatprep.mubr.msk.bf16.mxu0 %vm441_vm0, %v440_v0  ;;  %vm97_vm1 = vcmask 130048   ;;  %v81_v3 = vpack.c.bf16 %v80_v2, %v80_v2  ;;  %v338_v4 = vld [vmem:[#allocation6 + $0x8] sm:$0xff]   ;;  %v339_v5 = vld [vmem:[#allocation6] sm:$0xff]   ;;  %v288_v6 = vld [vmem:[%s519_s2] ss:$0 sm:$0xff]  ;;  %vm166_vm2 = vcmask 261120  }
  0x34   :  { %313 = vmatprep.subr.bf16.mxu1 %v440_v0  ;;  %317 = vmatprep.mubr.msk.bf16.mxu1 %vm441_vm0, %v440_v0  ;;  %v340_v14 = vld [vmem:[#allocation7 + $0x8] sm:$0xff]   ;;  %v341_v15 = vld [vmem:[#allocation7] sm:$0xff]  }
  0x35   :  { %308 = vmatpush3.bf16.msra.mxu0 %v337_v1  ;;  %314 = vmatpush3.bf16.msra.mxu1 %v338_v4  ;;  %v291_v16 = vld [vmem:[%s521_s4] ss:$0 sm:$0xff] }
  0x36   :  { %321 = vmatprep.subr.bf16.mxu0 %v440_v0  ;;  %315 = vmatprep.subr.bf16.mxu1 %v440_v0  ;;  %v295_v24 = vld [vmem:[%s523_s6] ss:$0 sm:$0xff] }
  0x38   :  { %310 = vmatmul.mubr.msk.bf16.vlgmr.msra.gmra.mxu0 %vm97_vm1, %v81_v3 }
  0x39   :  { %325 = vmatprep.mubr.msk.bf16.mxu0 %vm441_vm0, %v440_v0  ;;  %316 = vmatpush3.bf16.msra.mxu1 %v339_v5 }
  0x3a   :  { %322 = vmatpush3.bf16.msra.mxu0 %v340_v14 }
  0x3b   :  { %323 = vmatprep.subr.bf16.mxu0 %v440_v0 }
  0x3e   :  { %324 = vmatpush3.bf16.msra.mxu0 %v341_v15 }
  0xf8   :  { %v135_v7 = vpop.f32.mrf.mxu0 }
  0xf9   :  { %v136_v8 = vadd.f32 %v288_v6, %v135_v7 }
  0xfa   :  { %v311_v9 = vpop.f32.mrf.mxu0 }
  0xfb   :  { %342 = vtanh.f32 %v136_v8 }
  0xfc   :  { %v138_v10 = vpop.f32.mrf.mxu0 }
  0xfe   :  { %v312_v11 = vpop.f32.mrf.mxu0 }
 0x108   :  { %v343_v12 = vpop.eup %342 }
 0x109   :  { %v142_v13 = vpack.c.bf16 %v343_v12, %v343_v12 }
 0x10b   :  { %318 = vmatmul.mubr.msk.bf16.vlgmr.msra.gmra.mxu1 %vm166_vm2, %v142_v13 }
 0x1cb   :  { %v204_v17 = vpop.f32.mrf.mxu1 }
 0x1cc   :  { %v205_v18 = vadd.f32 %v291_v16, %v204_v17 }
 0x1cd   :  { %v319_v19 = vpop.f32.mrf.mxu1 }
 0x1ce   :  { %344 = vtanh.f32 %v205_v18 }
 0x1cf   :  { %v207_v20 = vpop.f32.mrf.mxu1 }
 0x1d1   :  { %v320_v21 = vpop.f32.mrf.mxu1 }
 0x1db   :  { %v345_v22 = vpop.eup %344 }
 0x1dc   :  { %v211_v23 = vpack.c.bf16 %v345_v22, %v345_v22 }
 0x1de   :  { %326 = vmatmul.mubr.msk.bf16.vlgmr.msra.gmra.mxu0 %vm166_vm2, %v211_v23 }
 0x29e   :  { %v272_v25 = vpop.f32.mrf.mxu0 }
 0x29f   :  { %v273_v26 = vadd.f32 %v295_v24, %v272_v25 }
 0x2a0   :  { %v327_v27 = vpop.f32.mrf.mxu0 }
 0x2a1   :  { %346 = vtanh.f32 %v273_v26 }
 0x2a2   :  { %v275_v28 = vpop.f32.mrf.mxu0 }
 0x2a4   :  { %v328_v29 = vpop.f32.mrf.mxu0 }
 0x2ae   :  { %v347_v30 = vpop.eup %346 }
 0x2af   :  { %v279_v31 = vmul.f32 2.0, %v347_v30 }
 0x2b1   :  { %280 = vst [vmem:[%s524_s7] sm:$0xff] %v279_v31 }
 0x2b2   :  { %285 = vsyncpa [#allocation3], 1 }
 0x2b3   :  { %286 = vsyncpa [#allocation5], 1 }
 0x2b4   :  { %287 = vsyncpa [#allocation8], 1 }

</bundles_post_ra>
